<compile_context>
chip_gen: v5e
topology: v5e:2x2
jax: 0.10.0
libtpu: 0.0.40
codegen_flags: <defaults>
</compile_context>

<pallas_src>
import functools

import jax
import jax.numpy as jnp
from jax.experimental import pallas as pl
from jax.experimental.pallas import tpu as pltpu

HIDDEN = 24   # fixed by the module definition
LANE = 128    # TPU lane width; hidden / action dims padded up to this
_SUB = 16     # bf16 sublane packing; batch tiles are multiples of this


def _round_up(n, m):
    return (n + m - 1) // m * m


def pongnet_kernel(x_ref, w1_ref, w23_ref, b_ref, o_ref):
    # In-kernel f32 -> bf16 cast of the streamed x tile (no wrapper-side cast pass).
    x = x_ref[...].astype(jnp.bfloat16)
    # fc1 + ReLU  (bf16 operands, f32 accumulation on the MXU, f32 bias add)
    h1 = jnp.dot(x, w1_ref[...], preferred_element_type=jnp.float32) + b_ref[0:1, :]
    h1 = jnp.maximum(h1, 0.0).astype(jnp.bfloat16)
    # fc2 + ReLU
    h2 = jnp.dot(h1, w23_ref[0], preferred_element_type=jnp.float32) + b_ref[1:2, :]
    h2 = jnp.maximum(h2, 0.0).astype(jnp.bfloat16)
    # fc3 (no activation). Padded lanes are exactly zero by construction
    # (zero-padded w3 columns + zero-padded bias).
    out = jnp.dot(h2, w23_ref[1], preferred_element_type=jnp.float32) + b_ref[2:3, :]
    # bf16 store: halves the dominant HBM output stream.
    o_ref[...] = out.astype(o_ref.dtype)


def pack_params(params):
    """Pad / pack the PyTorch-layout params into lane-dense bf16 slabs + f32 biases."""
    w1, b1 = params["w1"], params["b1"]
    w2, b2 = params["w2"], params["b2"]
    w3, b3 = params["w3"], params["b3"]
    state_size = w1.shape[0]
    n_actions = w3.shape[1]

    w1p = jnp.zeros((state_size, LANE), jnp.bfloat16)
    w1p = w1p.at[:, :HIDDEN].set(w1.astype(jnp.bfloat16))
    w2p = jnp.zeros((LANE, LANE), jnp.bfloat16)
    w2p = w2p.at[:HIDDEN, :HIDDEN].set(w2.astype(jnp.bfloat16))
    w3p = jnp.zeros((LANE, LANE), jnp.bfloat16)
    w3p = w3p.at[:HIDDEN, :n_actions].set(w3.astype(jnp.bfloat16))
    w23 = jnp.stack([w2p, w3p])                        # (2, 128, 128) bf16

    bias = jnp.zeros((3, LANE), jnp.float32)
    bias = bias.at[0, :HIDDEN].set(b1.reshape(-1))
    bias = bias.at[1, :HIDDEN].set(b2.reshape(-1))
    bias = bias.at[2, :n_actions].set(b3.reshape(-1))   # (3, 128) f32
    return w1p, w23, bias


def _choose_tile(batch, block_batch):
    """Batch tile: multiple of the bf16 sublane pack, capped so the grid has at least
    two steps whenever the batch allows (v7x megacore), and never larger than needed."""
    tb_req = _round_up(max(block_batch, _SUB), _SUB)
    half = _round_up(max(1, -(-batch // 2)), _SUB)       # ceil(batch/2) rounded up
    return max(_SUB, min(tb_req, half))


@functools.partial(jax.jit, static_argnames=("block_batch",))
def pongnet_forward(x, params, *, block_batch=4096):
    """PongNet forward pass.

    x: (batch, state_size) float32
    params: dict with w1 (state,24), b1 (1,24), w2 (24,24), b2 (1,24),
            w3 (24,n_actions), b3 (1,n_actions)  [weights stored as W_pytorch.T]
    Returns (batch, n_actions) float32.
    """
    batch, state_size = x.shape
    n_actions = params["w3"].shape[1]
    w1p, w23, bias = pack_params(params)

    tb = _choose_tile(batch, block_batch)
    padded_batch = _round_up(batch, tb)

    xp = x
    if padded_batch != batch:
        xp = jnp.pad(x, ((0, padded_batch - batch), (0, 0)))

    grid = (padded_batch // tb,)

    # Advisory cost estimate for XLA's scheduler around this mem-bound custom call.
    flops = 2 * padded_batch * (state_size * LANE + 2 * LANE * LANE)
    bytes_accessed = (
        padded_batch * (state_size * 4 + LANE * 2)          # x in (f32) + out (bf16)
        + state_size * LANE * 2 + 2 * LANE * LANE * 2        # bf16 weights
        + 3 * LANE * 4                                       # f32 biases
    )

    out = pl.pallas_call(
        pongnet_kernel,
        out_shape=jax.ShapeDtypeStruct((padded_batch, LANE), jnp.bfloat16),
        grid=grid,
        in_specs=[
            pl.BlockSpec((tb, state_size), lambda i: (i, 0)),       # streamed x tiles (f32)
            pl.BlockSpec((state_size, LANE), lambda i: (0, 0)),     # VMEM-resident weights
            pl.BlockSpec((2, LANE, LANE), lambda i: (0, 0, 0)),
            pl.BlockSpec((3, LANE), lambda i: (0, 0)),
        ],
        out_specs=pl.BlockSpec((tb, LANE), lambda i: (i, 0)),       # lane-dense bf16 slab
        compiler_params=pltpu.CompilerParams(
            dimension_semantics=("parallel",),                      # megacore on v7x
        ),
        cost_estimate=pl.CostEstimate(
            flops=flops, transcendentals=0, bytes_accessed=bytes_accessed),
    )(xp, w1p, w23, bias)

    # If the consumer can take the padded bf16 slab (e.g. fused argmax), return `out`
    # directly instead — the slice/cast below is the remaining output-side HBM cost.
    return out[:batch, :n_actions].astype(jnp.float32)


def init_params(key, state_size, n_actions):
    """Deterministic init mimicking PyTorch nn.Linear default:
    U(-1/sqrt(fan_in), 1/sqrt(fan_in)) for both weight and bias.
    Weights stored as (in, out) = W_pytorch.T."""
    def linear(k, fan_in, fan_out):
        kw, kb = jax.random.split(k)
        bound = 1.0 / jnp.sqrt(float(fan_in))
        w = jax.random.uniform(kw, (fan_in, fan_out), jnp.float32, -bound, bound)
        b = jax.random.uniform(kb, (1, fan_out), jnp.float32, -bound, bound)
        return w, b

    k1, k2, k3 = jax.random.split(key, 3)
    w1, b1 = linear(k1, state_size, HIDDEN)
    w2, b2 = linear(k2, HIDDEN, HIDDEN)
    w3, b3 = linear(k3, HIDDEN, n_actions)
    return {"w1": w1, "b1": b1, "w2": w2, "b2": b2, "w3": w3, "b3": b3}


def pongnet_ref(x, p):
    """Pure-JAX reference mirroring the kernel's mixed precision
    (bf16 operands, f32 accumulation, f32 bias adds, bf16 output store)."""
    xb = x.astype(jnp.bfloat16)
    w1 = p["w1"].astype(jnp.bfloat16)
    w2 = p["w2"].astype(jnp.bfloat16)
    w3 = p["w3"].astype(jnp.bfloat16)
    h1 = jnp.maximum(jnp.dot(xb, w1, preferred_element_type=jnp.float32) + p["b1"], 0.0)
    h1 = h1.astype(jnp.bfloat16)
    h2 = jnp.maximum(jnp.dot(h1, w2, preferred_element_type=jnp.float32) + p["b2"], 0.0)
    h2 = h2.astype(jnp.bfloat16)
    out = jnp.dot(h2, w3, preferred_element_type=jnp.float32) + p["b3"]
    return out.astype(jnp.bfloat16).astype(jnp.float32)


if __name__ == "__main__":
    state_size = 8   # e.g. Pong state vector (paddle/ball positions & velocities)
    n_actions = 4

    key = jax.random.PRNGKey(0)
    kx, kx2, kp = jax.random.split(key, 3)
    params = init_params(kp, state_size, n_actions)

    # Case 1: tiny batch (single tile).
    batch = 2
    x = jax.random.normal(kx, (batch, state_size), jnp.float32)
    out = jax.block_until_ready(pongnet_forward(x, params))
    ref = pongnet_ref(x, params)
    assert out.shape == (batch, n_actions)
    assert out.dtype == jnp.float32
    assert jnp.allclose(out, ref, atol=2e-2, rtol=2e-2), "mismatch vs JAX reference (batch=2)"

    # Case 2: exercise the multi-tile batch grid (grid=(3,), padded batch).
    batch2 = 40
    x2 = jax.random.normal(kx2, (batch2, state_size), jnp.float32)
    out2 = jax.block_until_ready(pongnet_forward(x2, params, block_batch=16))
    ref2 = pongnet_ref(x2, params)
    assert out2.shape == (batch2, n_actions)
    assert jnp.allclose(out2, ref2, atol=2e-2, rtol=2e-2), "mismatch vs JAX reference (batch=40)"

    # Case 3: default tile selection with >=2 grid steps (megacore path).
    batch3 = 96
    x3 = jax.random.normal(kx, (batch3, state_size), jnp.float32)
    out3 = jax.block_until_ready(pongnet_forward(x3, params))
    ref3 = pongnet_ref(x3, params)
    assert out3.shape == (batch3, n_actions)
    assert jnp.allclose(out3, ref3, atol=2e-2, rtol=2e-2), "mismatch vs JAX reference (batch=96)"

    print("KERNEL_OK")
</pallas_src>

<mosaic_0001>
module attributes {stable_mosaic.version = 11 : i64} {
  func.func @pongnet_kernel(%arg0: i32, %arg1: memref<16x8xf32, #tpu.memory_space<vmem>>, %arg2: memref<8x128xbf16, #tpu.memory_space<vmem>>, %arg3: memref<2x128x128xbf16, #tpu.memory_space<vmem>>, %arg4: memref<3x128xf32, #tpu.memory_space<vmem>>, %arg5: memref<16x128xbf16, #tpu.memory_space<vmem>>) attributes {dimension_semantics = [#tpu.dimension_semantics<parallel>], iteration_bounds = array<i64: 1>, scalar_prefetch = 0 : i64, scratch_operands = 0 : i64, tpu.core_type = #tpu.core_type<tc>, window_params = [{transform_indices = @transform_0, window_bounds = array<i64: 16, 8>}, {pipeline_mode = #tpu.pipeline_mode<synchronous>, transform_indices = @transform_1, window_bounds = array<i64: 8, 128>}, {pipeline_mode = #tpu.pipeline_mode<synchronous>, transform_indices = @transform_2, window_bounds = array<i64: 2, 128, 128>}, {pipeline_mode = #tpu.pipeline_mode<synchronous>, transform_indices = @transform_3, window_bounds = array<i64: 3, 128>}, {transform_indices = @transform_4, window_bounds = array<i64: 16, 128>}]} {
    %c0 = arith.constant 0 : index
    %c0_0 = arith.constant 0 : index
    %0 = vector.load %arg1[%c0, %c0_0] : memref<16x8xf32, #tpu.memory_space<vmem>>, vector<16x8xf32>
    %1 = arith.truncf %0 : vector<16x8xf32> to vector<16x8xbf16>
    %c0_1 = arith.constant 0 : index
    %c0_2 = arith.constant 0 : index
    %2 = vector.load %arg2[%c0_1, %c0_2] : memref<8x128xbf16, #tpu.memory_space<vmem>>, vector<8x128xbf16>
    %cst = arith.constant dense<0.000000e+00> : vector<16x128xf32>
    %3 = tpu.matmul %1, %2, %cst {dimension_numbers = #tpu.dot_dimension_numbers<[1], [0], [0], [1], [0, 0, 1, 1], [], []>} : vector<16x8xbf16>, vector<8x128xbf16>, vector<16x128xf32> -> vector<16x128xf32>
    %c0_3 = arith.constant 0 : index
    %c0_4 = arith.constant 0 : index
    %4 = vector.load %arg4[%c0_3, %c0_4] : memref<3x128xf32, #tpu.memory_space<vmem>>, vector<1x128xf32>
    %5 = vector.broadcast %4 : vector<1x128xf32> to vector<16x128xf32>
    %6 = arith.addf %3, %5 : vector<16x128xf32>
    %cst_5 = arith.constant 0.000000e+00 : f32
    %7 = vector.broadcast %cst_5 : f32 to vector<16x128xf32>
    %8 = arith.maximumf %6, %7 : vector<16x128xf32>
    %9 = arith.truncf %8 : vector<16x128xf32> to vector<16x128xbf16>
    %c0_6 = arith.constant 0 : index
    %c0_7 = arith.constant 0 : index
    %c0_8 = arith.constant 0 : index
    %10 = vector.load %arg3[%c0_6, %c0_7, %c0_8] : memref<2x128x128xbf16, #tpu.memory_space<vmem>>, vector<1x128x128xbf16>
    %11 = vector.shape_cast %10 : vector<1x128x128xbf16> to vector<128x128xbf16>
    %cst_9 = arith.constant dense<0.000000e+00> : vector<16x128xf32>
    %12 = tpu.matmul %9, %11, %cst_9 {dimension_numbers = #tpu.dot_dimension_numbers<[1], [0], [0], [1], [0, 0, 1, 1], [], []>} : vector<16x128xbf16>, vector<128x128xbf16>, vector<16x128xf32> -> vector<16x128xf32>
    %c1 = arith.constant 1 : index
    %c0_10 = arith.constant 0 : index
    %13 = vector.load %arg4[%c1, %c0_10] : memref<3x128xf32, #tpu.memory_space<vmem>>, vector<1x128xf32>
    %14 = vector.broadcast %13 : vector<1x128xf32> to vector<16x128xf32>
    %15 = arith.addf %12, %14 : vector<16x128xf32>
    %cst_11 = arith.constant 0.000000e+00 : f32
    %16 = vector.broadcast %cst_11 : f32 to vector<16x128xf32>
    %17 = arith.maximumf %15, %16 : vector<16x128xf32>
    %18 = arith.truncf %17 : vector<16x128xf32> to vector<16x128xbf16>
    %c1_12 = arith.constant 1 : index
    %c0_13 = arith.constant 0 : index
    %c0_14 = arith.constant 0 : index
    %19 = vector.load %arg3[%c1_12, %c0_13, %c0_14] : memref<2x128x128xbf16, #tpu.memory_space<vmem>>, vector<1x128x128xbf16>
    %20 = vector.shape_cast %19 : vector<1x128x128xbf16> to vector<128x128xbf16>
    %cst_15 = arith.constant dense<0.000000e+00> : vector<16x128xf32>
    %21 = tpu.matmul %18, %20, %cst_15 {dimension_numbers = #tpu.dot_dimension_numbers<[1], [0], [0], [1], [0, 0, 1, 1], [], []>} : vector<16x128xbf16>, vector<128x128xbf16>, vector<16x128xf32> -> vector<16x128xf32>
    %c2 = arith.constant 2 : index
    %c0_16 = arith.constant 0 : index
    %22 = vector.load %arg4[%c2, %c0_16] : memref<3x128xf32, #tpu.memory_space<vmem>>, vector<1x128xf32>
    %23 = vector.broadcast %22 : vector<1x128xf32> to vector<16x128xf32>
    %24 = arith.addf %21, %23 : vector<16x128xf32>
    %25 = arith.truncf %24 : vector<16x128xf32> to vector<16x128xbf16>
    %c0_17 = arith.constant 0 : index
    %c0_18 = arith.constant 0 : index
    %26 = vector.load %arg5[%c0_17, %c0_18] : memref<16x128xbf16, #tpu.memory_space<vmem>>, vector<16x128xbf16>
    tpu.vector_store %arg5[%c0_17, %c0_18], %25 {strides = array<i32>} : memref<16x128xbf16, #tpu.memory_space<vmem>>, vector<16x128xbf16>,
    return
  }
  func.func @transform_0(%arg0: i32) -> (i32, i32) {
    %c0_i32 = arith.constant 0 : i32
    %c0_i32_0 = arith.constant 0 : i32
    return %arg0, %c0_i32 : i32, i32
  }
  func.func @transform_1(%arg0: i32) -> (i32, i32) {
    %c0_i32 = arith.constant 0 : i32
    %c0_i32_0 = arith.constant 0 : i32
    %c0_i32_1 = arith.constant 0 : i32
    return %c0_i32, %c0_i32_0 : i32, i32
  }
  func.func @transform_2(%arg0: i32) -> (i32, i32, i32) {
    %c0_i32 = arith.constant 0 : i32
    %c0_i32_0 = arith.constant 0 : i32
    %c0_i32_1 = arith.constant 0 : i32
    %c0_i32_2 = arith.constant 0 : i32
    return %c0_i32, %c0_i32_0, %c0_i32_1 : i32, i32, i32
  }
  func.func @transform_3(%arg0: i32) -> (i32, i32) {
    %c0_i32 = arith.constant 0 : i32
    %c0_i32_0 = arith.constant 0 : i32
    %c0_i32_1 = arith.constant 0 : i32
    return %c0_i32, %c0_i32_0 : i32, i32
  }
  func.func @transform_4(%arg0: i32) -> (i32, i32) {
    %c0_i32 = arith.constant 0 : i32
    %c0_i32_0 = arith.constant 0 : i32
    return %arg0, %c0_i32 : i32, i32
  }
}

</mosaic_0001>

<bundles_post_ra>
// kernel: pongnet_forward.1
= control target key start
LH: loop header
LB: loop body
LE: loop exit
PB: predicated region body
PF: predicated region fallthrough
CT: control target
= control target key end

     0   :  { %vm28_vm0 = vcmask 1043456   ;;  %vm24_vm1 = vcmask 64512   ;;  %s420_s1 = inlined_call_operand.vmem [shape: bf16[8,128], index: 1, kind: input, shape index: {}]   ;;  %s421_s0 = inlined_call_operand.vmem [shape: f32[16,8], index: 0, kind: input, shape index: {}]   ;;  %s422_s2 = inlined_call_operand.vmem [shape: bf16[2,128,128], index: 2, kind: input, shape index: {}]   ;;  %s423_s3 = inlined_call_operand.vmem [shape: f32[3,128], index: 3, kind: input, shape index: {}]   ;;  %s424_s4 = inlined_call_operand.vmem [shape: bf16[16,128], index: 4, kind: output, shape index: {}]  }
   0x1   :  { %v21_v0 = vld [vmem:[%s420_s1] sm:$0xf]  ;;  %v19_v2 = vld [vmem:[%s421_s0 + $0x8] sm:$0xff]  ;;  %v309_v5 = vld [vmem:[%s422_s2 + $0x38] sm:$0xff] }
   0x2   :  { %v18_v1 = vld [vmem:[%s421_s0] sm:$0xff]  ;;  %v30_v3 = vsel %vm28_vm0, %v21_v0, 0  ;;  %115 = vmatpush.bf16.msra.mxu1 %v309_v5  ;;  %v308_v6 = vld [vmem:[%s422_s2 + $0x30] sm:$0xff]  ;;  %v307_v7 = vld [vmem:[%s422_s2 + $0x28] sm:$0xff] }
   0x3   :  { %v20_v4 = vpack.c.bf16 %v19_v2, %v18_v1  ;;  %39 = vmatpush.bf16.msra.mxu0 %v30_v3  ;;  %v306_v8 = vld [vmem:[%s422_s2 + $0x20] sm:$0xff]  ;;  %v305_v9 = vld [vmem:[%s422_s2 + $0x18] sm:$0xff]  ;;  %v304_v10 = vld [vmem:[%s422_s2 + $0x10] sm:$0xff] }
   0x4   :  { %v303_v11 = vld [vmem:[%s422_s2 + $0x8] sm:$0xff]  ;;  %v302_v12 = vld [vmem:[%s422_s2] sm:$0xff]  ;;  %v317_v13 = vld [vmem:[%s422_s2 + $0x78] sm:$0xff] }
   0x5   :  { %199 = vmatpush.bf16.msra.mxu2 %v317_v13  ;;  %v316_v14 = vld [vmem:[%s422_s2 + $0x70] sm:$0xff]  ;;  %v315_v15 = vld [vmem:[%s422_s2 + $0x68] sm:$0xff]  ;;  %v314_v16 = vld [vmem:[%s422_s2 + $0x60] sm:$0xff] }
   0x6   :  { %221 = vmatmul.msk.bf16.vlgmr.msra.gmra.mxu0 %vm24_vm1, %v20_v4  ;;  %116 = vmatpush.bf16.msra.mxu1 %v308_v6  ;;  %v323_v18 = vld [vmem:[%s423_s3] ss:$0 sm:$0xff]  ;;  %v313_v25 = vld [vmem:[%s422_s2 + $0x58] sm:$0xff]  ;;  %v312_v26 = vld [vmem:[%s422_s2 + $0x50] sm:$0xff] }
   0x7   :  { %v311_v27 = vld [vmem:[%s422_s2 + $0x48] sm:$0xff]  ;;  %v310_v28 = vld [vmem:[%s422_s2 + $0x40] sm:$0xff] }
   0x8   :  { %v324_v30 = vld [vmem:[%s423_s3 + $0x1] ss:$0 sm:$0xff]  ;;  %v325_v38 = vld [vmem:[%s423_s3 + $0x2] ss:$0 sm:$0xff] }
   0x9   :  { %200 = vmatpush.bf16.msra.mxu2 %v316_v14 }
   0xa   :  { %117 = vmatpush.bf16.msra.mxu1 %v307_v7 }
   0xd   :  { %201 = vmatpush.bf16.msra.mxu2 %v315_v15 }
   0xe   :  { %118 = vmatpush.bf16.msra.mxu1 %v306_v8 }
  0x11   :  { %202 = vmatpush.bf16.msra.mxu2 %v314_v16 }
  0x12   :  { %119 = vmatpush.bf16.msra.mxu1 %v305_v9 }
  0x15   :  { %203 = vmatpush.bf16.msra.mxu2 %v313_v25 }
  0x16   :  { %120 = vmatpush.bf16.msra.mxu1 %v304_v10 }
  0x19   :  { %204 = vmatpush.bf16.msra.mxu2 %v312_v26 }
  0x1a   :  { %121 = vmatpush.bf16.msra.mxu1 %v303_v11 }
  0x1d   :  { %205 = vmatpush.bf16.msra.mxu2 %v311_v27 }
  0x1e   :  { %122 = vmatpush.bf16.msra.mxu1 %v302_v12 }
  0x21   :  { %206 = vmatpush.bf16.msra.mxu2 %v310_v28 }
  0x83   :  { %v41_v17 = vpop.f32.mrf.mxu0 }
  0x84   :  { %v42_v19 = vadd.f32 %v323_v18, %v41_v17 }
  0x86   :  { %v46_v22 = vmax.f32 %v42_v19, 0.0 }
  0x8b   :  { %v43_v20 = vpop.f32.mrf.mxu0 }
  0x8c   :  { %v44_v21 = vadd.f32 %v323_v18, %v43_v20 }
  0x8e   :  { %v47_v23 = vmax.f32 %v44_v21, 0.0 }
  0x90   :  { %v48_v24 = vpack.c.bf16 %v47_v23, %v46_v22 }
  0x92   :  { %123 = vmatmul.bf16.vlgmr.msra.gmra.mxu1 %v48_v24 }
 0x10f   :  { %v124_v29 = vpop.f32.mrf.mxu1 }
 0x110   :  { %v125_v31 = vadd.f32 %v324_v30, %v124_v29 }
 0x112   :  { %v129_v34 = vmax.f32 %v125_v31, 0.0 }
 0x117   :  { %v126_v32 = vpop.f32.mrf.mxu1 }
 0x118   :  { %v127_v33 = vadd.f32 %v324_v30, %v126_v32 }
 0x11a   :  { %v130_v35 = vmax.f32 %v127_v33, 0.0 }
 0x11c   :  { %v131_v36 = vpack.c.bf16 %v130_v35, %v129_v34 }
 0x11e   :  { %207 = vmatmul.bf16.vlgmr.msra.gmra.mxu2 %v131_v36 }
 0x1a1   :  { %v208_v37 = vpop.f32.mrf.mxu2 }
 0x1a2   :  { %v209_v40 = vadd.f32 %v325_v38, %v208_v37 }
 0x1a9   :  { %v210_v39 = vpop.f32.mrf.mxu2 }
 0x1aa   :  { %v211_v41 = vadd.f32 %v325_v38, %v210_v39 }
 0x1ac   :  { %v321_v42 = vpack.c.bf16 %v211_v41, %v209_v40 }
 0x1ae   :  { %322 = vst [vmem:[%s424_s4] sm:$0xff] %v321_v42  }

</bundles_post_ra>
